<compile_context>
chip_gen: v7x
topology: tpu7x:2x2x1
jax: 0.10.0
libtpu: 0.0.40
codegen_flags: <defaults>
</compile_context>

<pallas_src>
from functools import partial

import numpy as np
import jax
import jax.numpy as jnp
from jax.experimental import pallas as pl
from jax.experimental.pallas import tpu as pltpu


# ------------------------------------------------------------------ Pallas kernel

def hypergcn_kernel(a_ref, z_ref, out_ref):
    """One (dialogue, row-tile) step:  out = relu(A_blk @ Z_dia).

    a_ref   [TM, Pn] bf16  row tile of this dialogue's normalized operator A_d
    z_ref   [Pn, Gp] bf16  this dialogue's projected features Z_d = X_d @ W' + b'
    out_ref [TM, Gp] bf16  relu(A_blk @ Z_d)   (f32 MXU accumulation)
    """
    acc = jnp.dot(a_ref[...], z_ref[...], preferred_element_type=jnp.float32)
    out_ref[...] = jnp.maximum(acc, 0.0).astype(out_ref.dtype)


def _vmem_limit_bytes():
    """Generation-aware VMEM cap (~3/4 physical: ~96 MiB v5e/v6e, ~48 MiB v7x)."""
    try:
        cap = int(pltpu.get_tpu_info().vmem_capacity_bytes)
    except Exception:
        cap = 64 * 1024 * 1024
    return max(32 * 1024 * 1024, (cap * 3) // 4)


def run_hypergcn_blockdiag(a_blocks, z_blocks, *, tm):
    """a_blocks [n_dia, Pn, Pn] bf16, z_blocks [n_dia, Pn, Gp] bf16 -> [n_dia, Pn, Gp] bf16."""
    n_dia, Pn, _ = a_blocks.shape
    Gp = z_blocks.shape[-1]
    assert Pn % tm == 0

    return pl.pallas_call(
        hypergcn_kernel,
        out_shape=jax.ShapeDtypeStruct((n_dia, Pn, Gp), jnp.bfloat16),
        grid=(n_dia, Pn // tm),
        in_specs=[
            pl.BlockSpec((None, tm, Pn), lambda d, r: (d, r, 0)),   # A row tile of dialogue d
            pl.BlockSpec((None, Pn, Gp), lambda d, r: (d, 0, 0)),   # Z of dialogue d
        ],
        out_specs=pl.BlockSpec((None, tm, Gp), lambda d, r: (d, r, 0)),
        compiler_params=pltpu.CompilerParams(
            dimension_semantics=("parallel", "parallel"),   # megacore sharding on v7x
            vmem_limit_bytes=_vmem_limit_bytes()),
    )(a_blocks, z_blocks)


# ------------------------------------------------------------------ static host-side glue

def _round_up(x, m):
    return (x + m - 1) // m * m


def _pick_tm(Pn):
    for tm in (512, 256, 128):
        if Pn >= tm and Pn % tm == 0:
            return tm
    return Pn


def build_static_layout(dia_len, Pn):
    """Index tables (numpy, static per dia_len) for feature assembly / padding / reversal."""
    T = sum(dia_len)
    N = 3 * T
    fwd, node_l, node_a, node_v = [], [], [], []
    blk_l, blk_a, blk_v = [], [], []
    pad_idx = np.full((len(dia_len), Pn), N, np.int32)   # N -> appended zero row of Z
    off, noff = 0, 0
    for d, n in enumerate(dia_len):
        fwd += [off + t for t in range(n)]              # l rows of stacked [l; a; v]
        fwd += [T + off + t for t in range(n)]          # a rows
        fwd += [2 * T + off + t for t in range(n)]      # v rows
        node_l += [noff + t for t in range(n)]
        node_a += [noff + n + t for t in range(n)]
        node_v += [noff + 2 * n + t for t in range(n)]
        blk_l += [d * Pn + t for t in range(n)]
        blk_a += [d * Pn + n + t for t in range(n)]
        blk_v += [d * Pn + 2 * n + t for t in range(n)]
        pad_idx[d, :3 * n] = np.arange(noff, noff + 3 * n, dtype=np.int32)
        off += n
        noff += 3 * n
    as_i32 = lambda x: np.asarray(x, np.int32)
    return (as_i32(fwd), pad_idx, as_i32(node_l), as_i32(node_a), as_i32(node_v),
            as_i32(blk_l), as_i32(blk_a), as_i32(blk_v))


def build_A_blocks(dia_len, hyperedge_weight, Pn):
    """Per-dialogue normalized operator A_d = D_v^-1 H W_e D_e^-1 H^T, padded to [Pn, Pn].

    Hyperedge layout per dialogue of length n (faithful to create_hyper_index):
      edge 0: all l nodes, edge 1: all a nodes, edge 2: all v nodes,
      edge 3+k: {l_k, a_k, v_k}.
    """
    hyperedge_weight = np.asarray(hyperedge_weight, np.float32)
    n_edges_total = sum(n + 3 for n in dia_len)
    assert n_edges_total <= hyperedge_weight.shape[0], (
        f"hyperedge_weight too small: need {n_edges_total}, have {hyperedge_weight.shape[0]}")

    A = np.zeros((len(dia_len), Pn, Pn), np.float32)
    eoff = 0
    for d, n in enumerate(dia_len):
        H = np.zeros((3 * n, n + 3), np.float32)
        H[0:n, 0] = 1.0
        H[n:2 * n, 1] = 1.0
        H[2 * n:3 * n, 2] = 1.0
        for k in range(n):
            H[[k, n + k, 2 * n + k], 3 + k] = 1.0
        w_e = hyperedge_weight[eoff:eoff + n + 3]
        d_e = H.sum(axis=0)
        d_v = (H * w_e[None, :]).sum(axis=1)
        we_de = np.where(d_e > 0, w_e / np.maximum(d_e, 1e-12), 0.0)
        dv_inv = np.where(d_v > 0, 1.0 / np.maximum(d_v, 1e-12), 0.0)
        A[d, :3 * n, :3 * n] = (dv_inv[:, None] * H) @ (we_de[:, None] * H.T)
        eoff += n + 3
    return A


_STATIC_CACHE = {}   # (dia_len, used-weight bytes) -> device-resident statics


def _get_statics(dia_len, hyperedge_weight):
    dia_len = tuple(int(x) for x in dia_len)
    Pn = _round_up(max(3 * n for n in dia_len), 128)
    n_edges = sum(n + 3 for n in dia_len)
    w_used = np.asarray(hyperedge_weight, np.float32)[:n_edges]
    key = (dia_len, Pn, w_used.tobytes())
    if key not in _STATIC_CACHE:
        idx = build_static_layout(dia_len, Pn)
        A = build_A_blocks(dia_len, hyperedge_weight, Pn)
        _STATIC_CACHE[key] = (
            jnp.asarray(A, jnp.bfloat16),
            tuple(jnp.asarray(x) for x in idx),
            Pn,
        )
    return _STATIC_CACHE[key]


# ------------------------------------------------------------------ jitted device forward

@partial(jax.jit, static_argnames=("tm",))
def _device_forward(a, v, l, a_blocks, wfc, bfc, theta,
                    fwd_idx, pad_idx, node_l, node_a, node_v,
                    blk_l, blk_a, blk_v, *, tm):
    # ---- create_hyper_index feature assembly (one gather)
    stacked = jnp.concatenate([l, a, v], axis=0)                         # [3T, n_dim]
    feature = jnp.take(stacked, fwd_idx, axis=0)                         # [N,  n_dim]

    # ---- fc folded into the conv weight, projection hoisted out of the kernel
    w_fused = jnp.dot(wfc, theta)                                        # [n_dim, Gp]
    b_fused = jnp.dot(bfc, theta)                                        # [1,     Gp]
    z = (jnp.dot(feature, w_fused, preferred_element_type=jnp.float32)
         + b_fused).astype(jnp.bfloat16)                                 # [N, Gp] bf16

    # ---- scatter Z into per-dialogue padded blocks (sentinel row = zeros)
    z_ext = jnp.concatenate([z, jnp.zeros((1, z.shape[1]), z.dtype)], axis=0)
    z_blocks = jnp.take(z_ext, pad_idx, axis=0)                          # [n_dia, Pn, Gp] bf16

    # ---- fused block-diagonal hypergraph conv (Pallas hot path)
    out_blocks = run_hypergcn_blockdiag(a_blocks, z_blocks, tm=tm)       # bf16
    out_flat = out_blocks.reshape((-1, out_blocks.shape[-1]))            # [n_dia*Pn, Gp]

    # ---- use_residue (cat([feature, out], 1)) fused with reverse_features
    f_dt = feature.dtype
    final = jnp.concatenate([
        jnp.take(feature, node_l, axis=0), jnp.take(out_flat, blk_l, axis=0).astype(f_dt),
        jnp.take(feature, node_a, axis=0), jnp.take(out_flat, blk_a, axis=0).astype(f_dt),
        jnp.take(feature, node_v, axis=0), jnp.take(out_flat, blk_v, axis=0).astype(f_dt),
    ], axis=-1)                                                          # [T, 3*(n_dim+Gp)]
    return final


def hypergcn_forward(a, v, l, dia_len, qmask, params):
    """Forward pass (use_sp/use_position/use_cl/use_g/use_gcn = False, use_residue = True)."""
    del qmask  # unused with use_sp=False
    a_blocks, idx, Pn = _get_statics(dia_len, params["hyperedge_weight"])
    tm = _pick_tm(Pn)
    out = _device_forward(a, v, l, a_blocks,
                          params["wfc"], params["bfc"], params["theta"],
                          *idx, tm=tm)
    loss_cl = jnp.float32(0.0)
    loss_g = jnp.float32(0.0)
    return out, loss_cl, loss_g


# ------------------------------------------------------------------ main

if __name__ == "__main__":
    n_dim = 128        # feature dim (torch default 512; shrunk, lane-aligned)
    graph_dim = 128    # args.graph_dim
    dia_len = [4, 3]   # two dialogues -> 7 utterances, 21 hypergraph nodes
    T = sum(dia_len)
    n_speakers = 9

    key = jax.random.PRNGKey(0)
    k_a, k_v, k_l, k_w, k_b, k_t, k_ha1, k_ha2, k_q = jax.random.split(key, 9)

    a = jax.random.normal(k_a, (T, n_dim), jnp.float32)
    v = jax.random.normal(k_v, (T, n_dim), jnp.float32)
    l = jax.random.normal(k_l, (T, n_dim), jnp.float32)
    qmask = jax.random.uniform(k_q, (max(dia_len), len(dia_len), n_speakers), jnp.float32)

    params = {
        # fc: nn.Linear(n_dim, graph_dim) stored as [n_dim, graph_dim] for X @ W
        "wfc": jax.random.normal(k_w, (n_dim, graph_dim), jnp.float32) * 0.05,
        "bfc": jax.random.normal(k_b, (1, graph_dim), jnp.float32) * 0.01,
        # hgnn conv weight (see TODO(synk) at top)
        "theta": jax.random.normal(k_t, (graph_dim, graph_dim), jnp.float32) * 0.05,
        # nn.Parameter(torch.ones(1000))
        "hyperedge_weight": np.ones((1000,), np.float32),
        # nn.Parameter(torch.rand(n_dim)) x2 -- kept for fidelity (consumed inside hgnn/generator)
        "hyperedge_attr1": jax.random.uniform(k_ha1, (n_dim,), jnp.float32),
        "hyperedge_attr2": jax.random.uniform(k_ha2, (n_dim,), jnp.float32),
    }

    out, loss_cl, loss_g = hypergcn_forward(a, v, l, dia_len, qmask, params)
    out = jax.block_until_ready(out)

    expected_shape = (T, 3 * (n_dim + graph_dim))
    assert out.shape == expected_shape, (out.shape, expected_shape)
    assert bool(jnp.all(jnp.isfinite(out)))
    print("KERNEL_OK")
</pallas_src>

<mosaic_0001>
module attributes {stable_mosaic.version = 11 : i64} {
  func.func @hypergcn_kernel(%arg0: i32, %arg1: i32, %arg2: memref<1x128x128xbf16, #tpu.memory_space<vmem>>, %arg3: memref<1x128x128xbf16, #tpu.memory_space<vmem>>, %arg4: memref<1x128x128xbf16, #tpu.memory_space<vmem>>) attributes {dimension_semantics = [#tpu.dimension_semantics<parallel>, #tpu.dimension_semantics<parallel>], iteration_bounds = array<i64: 2, 1>, scalar_prefetch = 0 : i64, scratch_operands = 0 : i64, tpu.core_type = #tpu.core_type<tc>, window_params = [{transform_indices = @transform_0, window_bounds = array<i64: 1, 128, 128>}, {transform_indices = @transform_1, window_bounds = array<i64: 1, 128, 128>}, {transform_indices = @transform_2, window_bounds = array<i64: 1, 128, 128>}]} {
    %c0 = arith.constant 0 : index
    %c0_0 = arith.constant 0 : index
    %c0_1 = arith.constant 0 : index
    %0 = vector.load %arg2[%c0, %c0_0, %c0_1] : memref<1x128x128xbf16, #tpu.memory_space<vmem>>, vector<1x128x128xbf16>
    %1 = vector.shape_cast %0 : vector<1x128x128xbf16> to vector<128x128xbf16>
    %c0_2 = arith.constant 0 : index
    %c0_3 = arith.constant 0 : index
    %c0_4 = arith.constant 0 : index
    %2 = vector.load %arg3[%c0_2, %c0_3, %c0_4] : memref<1x128x128xbf16, #tpu.memory_space<vmem>>, vector<1x128x128xbf16>
    %3 = vector.shape_cast %2 : vector<1x128x128xbf16> to vector<128x128xbf16>
    %cst = arith.constant dense<0.000000e+00> : vector<128x128xf32>
    %4 = tpu.matmul %1, %3, %cst {dimension_numbers = #tpu.dot_dimension_numbers<[1], [0], [0], [1], [0, 0, 1, 1], [], []>} : vector<128x128xbf16>, vector<128x128xbf16>, vector<128x128xf32> -> vector<128x128xf32>
    %cst_5 = arith.constant 0.000000e+00 : f32
    %5 = vector.broadcast %cst_5 : f32 to vector<128x128xf32>
    %6 = arith.maximumf %4, %5 : vector<128x128xf32>
    %7 = arith.truncf %6 : vector<128x128xf32> to vector<128x128xbf16>
    %c0_6 = arith.constant 0 : index
    %c0_7 = arith.constant 0 : index
    %c0_8 = arith.constant 0 : index
    %8 = vector.load %arg4[%c0_6, %c0_7, %c0_8] : memref<1x128x128xbf16, #tpu.memory_space<vmem>>, vector<1x128x128xbf16>
    %9 = vector.shape_cast %8 : vector<1x128x128xbf16> to vector<128x128xbf16>
    %10 = vector.shape_cast %7 : vector<128x128xbf16> to vector<1x128x128xbf16>
    tpu.vector_store %arg4[%c0_6, %c0_7, %c0_8], %10 {strides = array<i32>} : memref<1x128x128xbf16, #tpu.memory_space<vmem>>, vector<1x128x128xbf16>,
    return
  }
  func.func @transform_0(%arg0: i32, %arg1: i32) -> (i32, i32, i32) {
    %c0_i32 = arith.constant 0 : i32
    %c0_i32_0 = arith.constant 0 : i32
    return %arg0, %arg1, %c0_i32 : i32, i32, i32
  }
  func.func @transform_1(%arg0: i32, %arg1: i32) -> (i32, i32, i32) {
    %c0_i32 = arith.constant 0 : i32
    %c0_i32_0 = arith.constant 0 : i32
    %c0_i32_1 = arith.constant 0 : i32
    return %arg0, %c0_i32, %c0_i32_0 : i32, i32, i32
  }
  func.func @transform_2(%arg0: i32, %arg1: i32) -> (i32, i32, i32) {
    %c0_i32 = arith.constant 0 : i32
    %c0_i32_0 = arith.constant 0 : i32
    return %arg0, %arg1, %c0_i32 : i32, i32, i32
  }
}

</mosaic_0001>

<bundles_post_ra>
// kernel: _device_forward.1
= control target key start
LH: loop header
LB: loop body
LE: loop exit
PB: predicated region body
PF: predicated region fallthrough
CT: control target
= control target key end

     0   :  { %s878_s9 = smov 0   ;;  %s880_s10 = smov 0   ;;  %s949_s0 = inlined_call_operand.vmem [shape: bf16[2,128,128], index: 0, kind: input, shape index: {}]   ;;  %s950_s1 = inlined_call_operand.vmem [shape: bf16[2,128,128], index: 1, kind: input, shape index: {}]   ;;  %s951_s2 = inlined_call_operand.vmem [shape: bf16[2,128,128], index: 2, kind: output, shape index: {}]  }
   0x1   :  { %s882_s11 = smov 0  }
   0x2 LB: > { %s24_s12 = sadd.s32 1, %s857_s10  ;;  %p628_p0 = scmp.ge.s32.totalorder %s861_s11, 1  ;;  %s861_s11 = sphi %s882_s11, %s12_s11   ;;  %s857_s10 = sphi %s880_s10, %s953_s10   ;;  %s853_s9 = sphi %s878_s9, %s952_s9  }
   0x3   : > { %p26_p1 = scmp.ge.s32.totalorder %s24_s12, 2  ;;  %p143_p2 = scmp.lt.s32.totalorder %s861_s11, 3 }
   0x5   : > { %s955_s12 = smov (%p26_p1, %s24_s12), 0  ;;  %p144_p3 = pnand %p628_p0, %p143_p2 }
   0x6   : > { %p179_p4 = scmp.lt.s32.totalorder (!%p144_p3), %s853_s9, 1 }
   0x7   : > { %147 = sbr.rel (%p144_p3) target bundleno = 278 (0x116), region = 28 }
   0xe   : > { %s957_s9 = smov (!%p179_p4, %s853_s9), 1 }
   0xf   : > { %s896_s13 = sshll.u32 %s957_s9, 6 }
  0x10   : > { %s902_s16 = scalar_lea.vmem %s950_s1, %s896_s13  ;;  %s911_s19 = scalar_lea.vmem %s949_s0, %s896_s13 }
  0x11   : > { %v823_v0 = vld [vmem:[%s902_s16] sm:$0xff]   ;;  %v824_v1 = vld [vmem:[%s902_s16 + $0x8] sm:$0xff]   ;;  %v825_v2 = vld [vmem:[%s902_s16 + $0x10] sm:$0xff]   ;;  %s930_s22 = scalar_lea.vmem %s951_s2, %s896_s13 }
  0x12   : > { %751 = vmatprep.subr.bf16.mxu0 %v823_v0  ;;  %783 = vmatprep.subr.bf16.mxu1 %v823_v0  ;;  %v826_v3 = vld [vmem:[%s902_s16 + $0x18] sm:$0xff]   ;;  %v831_v4 = vld [vmem:[%s911_s19] sm:$0xff]   ;;  %v828_v7 = vld [vmem:[%s902_s16 + $0x28] sm:$0xff]  }
  0x13   : > { %752 = vmatpush3.bf16.msra.mxu0 %v823_v0  ;;  %791 = vmatpush3.bf16.msra.mxu1 %v823_v0  ;;  %v832_v5 = vld [vmem:[%s911_s19 + $0x20] sm:$0xff]   ;;  %v829_v8 = vld [vmem:[%s902_s16 + $0x30] sm:$0xff]   ;;  %v830_v9 = vld [vmem:[%s902_s16 + $0x38] sm:$0xff]  }
  0x14   : > { %753 = vmatprep.subr.bf16.mxu0 %v824_v1  ;;  %784 = vmatprep.subr.bf16.mxu1 %v824_v1  ;;  %v827_v6 = vld [vmem:[%s902_s16 + $0x20] sm:$0xff]   ;;  %v833_v10 = vld [vmem:[%s911_s19 + $0x8] sm:$0xff]   ;;  %v835_v12 = vld [vmem:[%s911_s19 + $0x10] sm:$0xff]  }
  0x15   : > { %767 = vmatprep.mubr.bf16.mxu0 %v831_v4  ;;  %775 = vmatprep.mubr.bf16.mxu1 %v832_v5  ;;  %v834_v11 = vld [vmem:[%s911_s19 + $0x28] sm:$0xff]   ;;  %v836_v13 = vld [vmem:[%s911_s19 + $0x30] sm:$0xff]   ;;  %v837_v14 = vld [vmem:[%s911_s19 + $0x18] sm:$0xff]  }
  0x16   : > { %v838_v15 = vld [vmem:[%s911_s19 + $0x38] sm:$0xff]  }
  0x17   : > { %754 = vmatpush3.bf16.msra.mxu0 %v824_v1  ;;  %792 = vmatpush3.bf16.msra.mxu1 %v824_v1 }
  0x18   : > { %755 = vmatprep.subr.bf16.mxu0 %v825_v2  ;;  %785 = vmatprep.subr.bf16.mxu1 %v825_v2 }
  0x1b   : > { %756 = vmatpush3.bf16.msra.mxu0 %v825_v2  ;;  %793 = vmatpush3.bf16.msra.mxu1 %v825_v2 }
  0x1c   : > { %757 = vmatprep.subr.bf16.mxu0 %v826_v3  ;;  %786 = vmatprep.subr.bf16.mxu1 %v826_v3 }
  0x1f   : > { %758 = vmatpush3.bf16.msra.mxu0 %v826_v3  ;;  %794 = vmatpush3.bf16.msra.mxu1 %v826_v3 }
  0x20   : > { %759 = vmatprep.subr.bf16.mxu0 %v827_v6  ;;  %787 = vmatprep.subr.bf16.mxu1 %v827_v6 }
  0x23   : > { %760 = vmatpush3.bf16.msra.mxu0 %v827_v6  ;;  %795 = vmatpush3.bf16.msra.mxu1 %v827_v6 }
  0x24   : > { %761 = vmatprep.subr.bf16.mxu0 %v828_v7  ;;  %788 = vmatprep.subr.bf16.mxu1 %v828_v7 }
  0x27   : > { %762 = vmatpush3.bf16.msra.mxu0 %v828_v7  ;;  %796 = vmatpush3.bf16.msra.mxu1 %v828_v7 }
  0x28   : > { %763 = vmatprep.subr.bf16.mxu0 %v829_v8  ;;  %789 = vmatprep.subr.bf16.mxu1 %v829_v8 }
  0x2b   : > { %764 = vmatpush3.bf16.msra.mxu0 %v829_v8  ;;  %797 = vmatpush3.bf16.msra.mxu1 %v829_v8 }
  0x2c   : > { %765 = vmatprep.subr.bf16.mxu0 %v830_v9  ;;  %790 = vmatprep.subr.bf16.mxu1 %v830_v9 }
  0x2f   : > { %766 = vmatpush3.bf16.msra.mxu0 %v830_v9  ;;  %798 = vmatpush3.bf16.msra.mxu1 %v830_v9 }
  0x32   : > { %768 = vmatmul.mubr.bf16.vlgmr.msra.gmra.mrb[0].mxu0 %v833_v10  ;;  %776 = vmatmul.mubr.bf16.vlgmr.msra.gmra.mrb[0].mxu1 %v834_v11 }
  0x33   : > { %771 = vmatprep.mubr.bf16.mxu0 %v835_v12  ;;  %779 = vmatprep.mubr.bf16.mxu1 %v836_v13 }
  0x3a   : > { %772 = vmatmul.mubr.bf16.gmra.mrb[4].mxu0 %v837_v14  ;;  %780 = vmatmul.mubr.bf16.gmra.mrb[4].mxu1 %v838_v15 }
 0x105   : > { %v769_v16 = vpop.f32.mrb[0].mxu0  ;;  %v777_v17 = vpop.f32.mrb[0].mxu1 }
 0x106   : > { %v366_v18 = vpop.f32.mrb[1].mxu0  ;;  %v398_v19 = vpop.f32.mrb[1].mxu1  ;;  %v431_v22 = vmax.f32 %v769_v16, 0.0  ;;  %v439_v23 = vmax.f32 %v777_v17, 0.0 }
 0x107   : > { %v770_v20 = vpop.f32.mrb[2].mxu0  ;;  %v778_v21 = vpop.f32.mrb[2].mxu1  ;;  %v429_v28 = vmax.f32 %v366_v18, 0.0  ;;  %v437_v29 = vmax.f32 %v398_v19, 0.0 }
 0x108   : > { %v432_v24 = vmax.f32 %v770_v20, 0.0  ;;  %v440_v25 = vmax.f32 %v778_v21, 0.0  ;;  %v369_v26 = vpop.f32.mrb[3].mxu0  ;;  %v401_v27 = vpop.f32.mrb[3].mxu1 }
 0x109   : > { %v430_v30 = vmax.f32 %v369_v26, 0.0  ;;  %v438_v31 = vmax.f32 %v401_v27, 0.0 }
 0x10a   : > { %v696_v32 = vpack.c.bf16 %v432_v24, %v431_v22  ;;  %v716_v33 = vpack.c.bf16 %v440_v25, %v439_v23 }
 0x10b   : > { %v691_v34 = vpack.c.bf16 %v430_v30, %v429_v28  ;;  %v711_v35 = vpack.c.bf16 %v438_v31, %v437_v29 }
 0x10c   : > { %728 = vst [vmem:[%s930_s22 + $0x8] sm:$0xff] %v696_v32   ;;  %732 = vst [vmem:[%s930_s22 + $0x28] sm:$0xff] %v716_v33  }
 0x10d   : > { %692 = vst [vmem:[%s930_s22] sm:$0xff] %v691_v34   ;;  %731 = vst [vmem:[%s930_s22 + $0x20] sm:$0xff] %v711_v35   ;;  %v773_v36 = vpop.f32.mrb[4].mxu0  ;;  %v781_v37 = vpop.f32.mrb[4].mxu1 }
 0x10e   : > { %v382_v38 = vpop.f32.mrb[5].mxu0  ;;  %v414_v39 = vpop.f32.mrb[5].mxu1  ;;  %v435_v42 = vmax.f32 %v773_v36, 0.0  ;;  %v443_v43 = vmax.f32 %v781_v37, 0.0 }
 0x10f   : > { %v774_v40 = vpop.f32.mrb[6].mxu0  ;;  %v782_v41 = vpop.f32.mrb[6].mxu1  ;;  %v433_v48 = vmax.f32 %v382_v38, 0.0  ;;  %v441_v49 = vmax.f32 %v414_v39, 0.0 }
 0x110   : > { %v436_v44 = vmax.f32 %v774_v40, 0.0  ;;  %v444_v45 = vmax.f32 %v782_v41, 0.0  ;;  %v385_v46 = vpop.f32.mrb[7].mxu0  ;;  %v417_v47 = vpop.f32.mrb[7].mxu1 }
 0x111   : > { %v434_v50 = vmax.f32 %v385_v46, 0.0  ;;  %v442_v51 = vmax.f32 %v417_v47, 0.0 }
 0x112   : > { %v706_v52 = vpack.c.bf16 %v436_v44, %v435_v42  ;;  %v726_v53 = vpack.c.bf16 %v444_v45, %v443_v43 }
 0x113   : > { %v701_v54 = vpack.c.bf16 %v434_v50, %v433_v48  ;;  %v721_v55 = vpack.c.bf16 %v442_v51, %v441_v49 }
 0x114   : > { %730 = vst [vmem:[%s930_s22 + $0x18] sm:$0xff] %v706_v52   ;;  %734 = vst [vmem:[%s930_s22 + $0x38] sm:$0xff] %v726_v53  }
 0x115   : > { %729 = vst [vmem:[%s930_s22 + $0x10] sm:$0xff] %v701_v54   ;;  %733 = vst [vmem:[%s930_s22 + $0x30] sm:$0xff] %v721_v55  }
 0x116 PF: > { %s12_s11 = sadd.s32 1, %s861_s11   ;;  %s952_s9 = smov %s857_s10 }
 0x117   : > { %p9_p5 = scmp.ge.s32.totalorder %s12_s11, 4   ;;  %s953_s10 = smov %s955_s12 }
 0x119   :  { %11 = sbr.rel (!%p9_p5) target bundleno = 2 (0x2), region = 61 }

</bundles_post_ra>
